<compile_context>
chip_gen: v6e
topology: v6e:2x2x1
jax: 0.10.0
libtpu: 0.0.40
codegen_flags: <defaults>
</compile_context>

<pallas_src>
import functools

import jax
import jax.numpy as jnp
from jax import lax
from jax.experimental import pallas as pl
from jax.experimental.pallas import tpu as pltpu

_MXU_DTYPE = jnp.bfloat16          # MXU operand dtype (accumulation stays f32)


def _dual_adain_resblk_kernel(params_ref,          # SMEM (8,) learned scalars
                              x_ref,               # (1, C, H*W) input block
                              w1_ref, w2_ref,      # (C, 9*C) im2col conv weights
                              stats_ref,           # (1, C, 4) AdaIN stats
                              mask_ref,            # (9, H*W) static tap validity mask
                              o_ref,               # (1, C, H*W) output block
                              hpad_ref,            # scratch (C, H*W + 2*(W+1)) flat halo
                              *, H, W):
    C = x_ref.shape[1]
    HW = H * W
    S = W + 1                                      # max |flat tap shift| (dy*W + dx)

    bias1a = params_ref[0]
    bias1b = params_ref[1]
    bias2a = params_ref[2]
    bias2b = params_ref[3]
    prelu1 = params_ref[4]
    prelu2 = params_ref[5]
    scale = params_ref[6]

    # Zero only the two small halo strips of the flat padded buffer (not the
    # whole buffer); the interior is fully overwritten before every conv.
    zeros_strip = jnp.zeros((C, S), jnp.float32)
    hpad_ref[:, 0:S] = zeros_strip
    hpad_ref[:, S + HW:S + HW + S] = zeros_strip

    def conv3x3(h, w_ref):
        """h: (C, HW) f32 conv input -> (C, HW) f32 output via one MXU matmul."""
        hpad_ref[:, S:S + HW] = h
        pieces = []
        for k in range(9):                          # 3x3 taps, k = ky*3 + kx
            dy, dx = k // 3 - 1, k % 3 - 1
            s = dy * W + dx                         # shift in flattened spatial axis
            win = hpad_ref[:, S + s:S + s + HW]     # (C, HW) shifted window (contiguous)
            pieces.append(win * mask_ref[k:k + 1, :])   # zero out-of-image taps
        patches = jnp.concatenate(pieces, axis=0).astype(_MXU_DTYPE)   # (9*C, HW)
        return jnp.dot(w_ref[...], patches, preferred_element_type=jnp.float32)

    x = x_ref[0]                                                # (C, HW) f32

    # out = actv1(x + bias1a)            (PReLU with a single learned slope)
    t = x + bias1a
    out = jnp.where(t >= 0.0, t, prelu1 * t)

    # out = conv1(out + bias1b)          3x3, stride 1, zero-pad 1, no bias
    out = conv3x3(out + bias1b, w1_ref)

    # AdaIN re-normalisation: alpha = sb_scale/sa_scale, beta = sb_mean - sa_mean*alpha
    st = stats_ref[0]                                           # (C, 4)
    alpha = st[:, 2:3] / st[:, 0:1]          # (C, 1)   (no epsilon: module semantics)
    beta = st[:, 3:4] - st[:, 1:2] * alpha
    out = out * alpha + beta

    # out = actv2(out + bias2a)
    t2 = out + bias2a
    out = jnp.where(t2 >= 0.0, t2, prelu2 * t2)

    # out = conv2(out + bias2b)
    out = conv3x3(out + bias2b, w2_ref)

    # out = out * scale + identity       (re-read x_ref: no long identity live range)
    o_ref[0] = out * scale + x_ref[0]


@jax.jit
def dual_adain_resblk(x_nchw, sa, sb, w1_oihw, w2_oihw, params_vec):
    """x_nchw: (B,C,H,W); sa, sb: (2,B,C,1,1); conv weights OIHW; params_vec: (8,)."""
    B, C, H, W = x_nchw.shape
    HW = H * W
    x_flat = x_nchw.reshape(B, C, HW).astype(jnp.float32)

    # AdaIN stats packed per (batch, channel): [sa_scale, sa_mean, sb_scale, sb_mean]
    stats = jnp.stack([sa[0, :, :, 0, 0], sa[1, :, :, 0, 0],
                       sb[0, :, :, 0, 0], sb[1, :, :, 0, 0]],
                      axis=-1).astype(jnp.float32)              # (B, C, 4)

    # Conv weights OIHW -> (Cout, 9*Cin), tap-major along K (k = ky*3 + kx).
    w1m = jnp.transpose(w1_oihw, (0, 2, 3, 1)).reshape(C, 9 * C).astype(_MXU_DTYPE)
    w2m = jnp.transpose(w2_oihw, (0, 2, 3, 1)).reshape(C, 9 * C).astype(_MXU_DTYPE)

    # Static per-tap zero-padding validity mask over flattened spatial positions.
    ys, xs = jnp.meshgrid(jnp.arange(H), jnp.arange(W), indexing="ij")
    masks = []
    for k in range(9):
        dy, dx = k // 3 - 1, k % 3 - 1
        valid = (ys + dy >= 0) & (ys + dy < H) & (xs + dx >= 0) & (xs + dx < W)
        masks.append(valid.reshape(HW))
    tapmask = jnp.stack(masks, axis=0).astype(jnp.float32)      # (9, HW) constant

    kernel = functools.partial(_dual_adain_resblk_kernel, H=H, W=W)

    out_flat = pl.pallas_call(
        kernel,
        grid=(B,),
        out_shape=jax.ShapeDtypeStruct((B, C, HW), jnp.float32),
        in_specs=[
            pl.BlockSpec(memory_space=pltpu.MemorySpace.SMEM),        # learned scalars
            pl.BlockSpec((1, C, HW), lambda b: (b, 0, 0)),            # x
            pl.BlockSpec((C, 9 * C), lambda b: (0, 0)),               # conv1 weight
            pl.BlockSpec((C, 9 * C), lambda b: (0, 0)),               # conv2 weight
            pl.BlockSpec((1, C, 4), lambda b: (b, 0, 0)),             # AdaIN stats
            pl.BlockSpec((9, HW), lambda b: (0, 0)),                  # tap mask
        ],
        out_specs=pl.BlockSpec((1, C, HW), lambda b: (b, 0, 0)),
        scratch_shapes=[pltpu.VMEM((C, HW + 2 * (W + 1)), jnp.float32)],
        compiler_params=pltpu.CompilerParams(
            dimension_semantics=("parallel",)),
    )(params_vec, x_flat, w1m, w2m, stats, tapmask)

    return out_flat.reshape(B, C, H, W)


def ref_forward(x, sa, sb, w1, w2, params_vec):
    """Pure-JAX NCHW reference mirroring the PyTorch module (all f32)."""
    b1a, b1b, b2a, b2b, p1, p2, scale = (params_vec[i] for i in range(7))
    identity = x
    t = x + b1a
    out = jnp.where(t >= 0.0, t, p1 * t)
    out = lax.conv_general_dilated(out + b1b, w1, window_strides=(1, 1),
                                   padding=((1, 1), (1, 1)),
                                   dimension_numbers=("NCHW", "OIHW", "NCHW"))
    alpha = sb[0] / sa[0]                                       # (B,C,1,1)
    beta = sb[1] - sa[1] * alpha
    out = out * alpha + beta
    t2 = out + b2a
    out = jnp.where(t2 >= 0.0, t2, p2 * t2)
    out = lax.conv_general_dilated(out + b2b, w2, window_strides=(1, 1),
                                   padding=((1, 1), (1, 1)),
                                   dimension_numbers=("NCHW", "OIHW", "NCHW"))
    return out * scale + identity


if __name__ == "__main__":
    key = jax.random.PRNGKey(0)
    B, C, H, W = 2, 8, 16, 16          # inplanes = planes = 8, stride = 1, downsample = None
    ks = jax.random.split(key, 8)

    x = jax.random.normal(ks[0], (B, C, H, W), jnp.float32)
    sa_scale = jax.random.uniform(ks[1], (B, C, 1, 1), jnp.float32, 0.5, 1.5)
    sa_mean = 0.3 * jax.random.normal(ks[2], (B, C, 1, 1), jnp.float32)
    sb_scale = jax.random.uniform(ks[3], (B, C, 1, 1), jnp.float32, 0.5, 1.5)
    sb_mean = 0.3 * jax.random.normal(ks[4], (B, C, 1, 1), jnp.float32)
    sa = jnp.stack([sa_scale, sa_mean], axis=0)        # (2, B, C, 1, 1)
    sb = jnp.stack([sb_scale, sb_mean], axis=0)        # (2, B, C, 1, 1)

    w1 = 0.1 * jax.random.normal(ks[5], (C, C, 3, 3), jnp.float32)   # conv1 weight (OIHW)
    w2 = 0.1 * jax.random.normal(ks[6], (C, C, 3, 3), jnp.float32)   # conv2 weight (OIHW)

    # Learned scalars: bias1a, bias1b, bias2a, bias2b, PReLU1 slope, PReLU2 slope,
    # scale, + one pad slot.
    params_vec = jnp.array([0.05, -0.03, 0.02, -0.01, 0.25, 0.25, 1.0, 0.0], jnp.float32)

    out = dual_adain_resblk(x, sa, sb, w1, w2, params_vec)
    out = jax.block_until_ready(out)

    ref = ref_forward(x, sa, sb, w1, w2, params_vec)
    assert out.shape == ref.shape == (B, C, H, W)

    # bf16 MXU operands with f32 accumulation -> looser tolerance than pure f32.
    abs_err = float(jnp.max(jnp.abs(out - ref)))
    rel_err = float(jnp.linalg.norm(out - ref) / jnp.linalg.norm(ref))
    if not (rel_err < 2e-2 and abs_err < 0.25):
        raise AssertionError(
            f"Pallas kernel mismatch vs reference: max abs err {abs_err}, rel l2 {rel_err}")
    print("KERNEL_OK")
</pallas_src>

<mosaic_0001>
module attributes {stable_mosaic.version = 11 : i64} {
  func.func @_dual_adain_resblk_kernel(%arg0: i32, %arg1: memref<8xf32, #tpu.memory_space<smem>>, %arg2: memref<1x8x256xf32, #tpu.memory_space<vmem>>, %arg3: memref<8x72xbf16, #tpu.memory_space<vmem>>, %arg4: memref<8x72xbf16, #tpu.memory_space<vmem>>, %arg5: memref<1x8x4xf32, #tpu.memory_space<vmem>>, %arg6: memref<9x256xf32, #tpu.memory_space<vmem>>, %arg7: memref<1x8x256xf32, #tpu.memory_space<vmem>>, %arg8: memref<8x290xf32, #tpu.memory_space<vmem>>) attributes {dimension_semantics = [#tpu.dimension_semantics<parallel>], iteration_bounds = array<i64: 2>, scalar_prefetch = 0 : i64, scratch_operands = 1 : i64, tpu.core_type = #tpu.core_type<tc>, window_params = [{transform_indices = @transform_0, window_bounds = array<i64: 8>}, {transform_indices = @transform_1, window_bounds = array<i64: 1, 8, 256>}, {pipeline_mode = #tpu.pipeline_mode<synchronous>, transform_indices = @transform_2, window_bounds = array<i64: 8, 72>}, {pipeline_mode = #tpu.pipeline_mode<synchronous>, transform_indices = @transform_3, window_bounds = array<i64: 8, 72>}, {transform_indices = @transform_4, window_bounds = array<i64: 1, 8, 4>}, {pipeline_mode = #tpu.pipeline_mode<synchronous>, transform_indices = @transform_5, window_bounds = array<i64: 9, 256>}, {transform_indices = @transform_6, window_bounds = array<i64: 1, 8, 256>}]} {
    %c0 = arith.constant 0 : index
    %0 = memref.load %arg1[%c0] : memref<8xf32, #tpu.memory_space<smem>>
    %c1 = arith.constant 1 : index
    %1 = memref.load %arg1[%c1] : memref<8xf32, #tpu.memory_space<smem>>
    %c2 = arith.constant 2 : index
    %2 = memref.load %arg1[%c2] : memref<8xf32, #tpu.memory_space<smem>>
    %c3 = arith.constant 3 : index
    %3 = memref.load %arg1[%c3] : memref<8xf32, #tpu.memory_space<smem>>
    %c4 = arith.constant 4 : index
    %4 = memref.load %arg1[%c4] : memref<8xf32, #tpu.memory_space<smem>>
    %c5 = arith.constant 5 : index
    %5 = memref.load %arg1[%c5] : memref<8xf32, #tpu.memory_space<smem>>
    %c6 = arith.constant 6 : index
    %6 = memref.load %arg1[%c6] : memref<8xf32, #tpu.memory_space<smem>>
    %cst = arith.constant 0.000000e+00 : f32
    %7 = vector.broadcast %cst : f32 to vector<8x17xf32>
    %c0_0 = arith.constant 0 : index
    %c0_1 = arith.constant 0 : index
    %8 = vector.load %arg8[%c0_0, %c0_1] : memref<8x290xf32, #tpu.memory_space<vmem>>, vector<8x17xf32>
    tpu.vector_store %arg8[%c0_0, %c0_1], %7 {strides = array<i32>} : memref<8x290xf32, #tpu.memory_space<vmem>>, vector<8x17xf32>,
    %c0_2 = arith.constant 0 : index
    %c273 = arith.constant 273 : index
    %9 = vector.load %arg8[%c0_2, %c273] : memref<8x290xf32, #tpu.memory_space<vmem>>, vector<8x17xf32>
    tpu.vector_store %arg8[%c0_2, %c273], %7 {strides = array<i32>} : memref<8x290xf32, #tpu.memory_space<vmem>>, vector<8x17xf32>,
    %c0_3 = arith.constant 0 : index
    %c0_4 = arith.constant 0 : index
    %c0_5 = arith.constant 0 : index
    %10 = vector.load %arg2[%c0_3, %c0_4, %c0_5] : memref<1x8x256xf32, #tpu.memory_space<vmem>>, vector<1x8x256xf32>
    %11 = vector.shape_cast %10 : vector<1x8x256xf32> to vector<8x256xf32>
    %12 = vector.broadcast %0 : f32 to vector<8x256xf32>
    %13 = arith.addf %11, %12 : vector<8x256xf32>
    %cst_6 = arith.constant 0.000000e+00 : f32
    %14 = vector.broadcast %cst_6 : f32 to vector<8x256xf32>
    %15 = arith.cmpf oge, %13, %14 : vector<8x256xf32>
    %16 = vector.broadcast %4 : f32 to vector<8x256xf32>
    %17 = arith.mulf %16, %13 : vector<8x256xf32>
    %18 = arith.select %15, %13, %17 : vector<8x256xi1>, vector<8x256xf32>
    %19 = vector.broadcast %1 : f32 to vector<8x256xf32>
    %20 = arith.addf %18, %19 : vector<8x256xf32>
    %c0_7 = arith.constant 0 : index
    %c17 = arith.constant 17 : index
    %21 = vector.load %arg8[%c0_7, %c17] : memref<8x290xf32, #tpu.memory_space<vmem>>, vector<8x256xf32>
    tpu.vector_store %arg8[%c0_7, %c17], %20 {strides = array<i32>} : memref<8x290xf32, #tpu.memory_space<vmem>>, vector<8x256xf32>,
    %c0_8 = arith.constant 0 : index
    %c0_9 = arith.constant 0 : index
    %22 = vector.load %arg8[%c0_8, %c0_9] : memref<8x290xf32, #tpu.memory_space<vmem>>, vector<8x256xf32>
    %c0_10 = arith.constant 0 : index
    %c0_11 = arith.constant 0 : index
    %23 = vector.load %arg6[%c0_10, %c0_11] : memref<9x256xf32, #tpu.memory_space<vmem>>, vector<1x256xf32>
    %24 = vector.broadcast %23 : vector<1x256xf32> to vector<8x256xf32>
    %25 = arith.mulf %22, %24 : vector<8x256xf32>
    %c0_12 = arith.constant 0 : index
    %c1_13 = arith.constant 1 : index
    %26 = vector.load %arg8[%c0_12, %c1_13] : memref<8x290xf32, #tpu.memory_space<vmem>>, vector<8x256xf32>
    %c1_14 = arith.constant 1 : index
    %c0_15 = arith.constant 0 : index
    %27 = vector.load %arg6[%c1_14, %c0_15] : memref<9x256xf32, #tpu.memory_space<vmem>>, vector<1x256xf32>
    %28 = vector.broadcast %27 : vector<1x256xf32> to vector<8x256xf32>
    %29 = arith.mulf %26, %28 : vector<8x256xf32>
    %c0_16 = arith.constant 0 : index
    %c2_17 = arith.constant 2 : index
    %30 = vector.load %arg8[%c0_16, %c2_17] : memref<8x290xf32, #tpu.memory_space<vmem>>, vector<8x256xf32>
    %c2_18 = arith.constant 2 : index
    %c0_19 = arith.constant 0 : index
    %31 = vector.load %arg6[%c2_18, %c0_19] : memref<9x256xf32, #tpu.memory_space<vmem>>, vector<1x256xf32>
    %32 = vector.broadcast %31 : vector<1x256xf32> to vector<8x256xf32>
    %33 = arith.mulf %30, %32 : vector<8x256xf32>
    %c0_20 = arith.constant 0 : index
    %c16 = arith.constant 16 : index
    %34 = vector.load %arg8[%c0_20, %c16] : memref<8x290xf32, #tpu.memory_space<vmem>>, vector<8x256xf32>
    %c3_21 = arith.constant 3 : index
    %c0_22 = arith.constant 0 : index
    %35 = vector.load %arg6[%c3_21, %c0_22] : memref<9x256xf32, #tpu.memory_space<vmem>>, vector<1x256xf32>
    %36 = vector.broadcast %35 : vector<1x256xf32> to vector<8x256xf32>
    %37 = arith.mulf %34, %36 : vector<8x256xf32>
    %c0_23 = arith.constant 0 : index
    %c17_24 = arith.constant 17 : index
    %38 = vector.load %arg8[%c0_23, %c17_24] : memref<8x290xf32, #tpu.memory_space<vmem>>, vector<8x256xf32>
    %c4_25 = arith.constant 4 : index
    %c0_26 = arith.constant 0 : index
    %39 = vector.load %arg6[%c4_25, %c0_26] : memref<9x256xf32, #tpu.memory_space<vmem>>, vector<1x256xf32>
    %40 = vector.broadcast %39 : vector<1x256xf32> to vector<8x256xf32>
    %41 = arith.mulf %38, %40 : vector<8x256xf32>
    %c0_27 = arith.constant 0 : index
    %c18 = arith.constant 18 : index
    %42 = vector.load %arg8[%c0_27, %c18] : memref<8x290xf32, #tpu.memory_space<vmem>>, vector<8x256xf32>
    %c5_28 = arith.constant 5 : index
    %c0_29 = arith.constant 0 : index
    %43 = vector.load %arg6[%c5_28, %c0_29] : memref<9x256xf32, #tpu.memory_space<vmem>>, vector<1x256xf32>
    %44 = vector.broadcast %43 : vector<1x256xf32> to vector<8x256xf32>
    %45 = arith.mulf %42, %44 : vector<8x256xf32>
    %c0_30 = arith.constant 0 : index
    %c32 = arith.constant 32 : index
    %46 = vector.load %arg8[%c0_30, %c32] : memref<8x290xf32, #tpu.memory_space<vmem>>, vector<8x256xf32>
    %c6_31 = arith.constant 6 : index
    %c0_32 = arith.constant 0 : index
    %47 = vector.load %arg6[%c6_31, %c0_32] : memref<9x256xf32, #tpu.memory_space<vmem>>, vector<1x256xf32>
    %48 = vector.broadcast %47 : vector<1x256xf32> to vector<8x256xf32>
    %49 = arith.mulf %46, %48 : vector<8x256xf32>
    %c0_33 = arith.constant 0 : index
    %c33 = arith.constant 33 : index
    %50 = vector.load %arg8[%c0_33, %c33] : memref<8x290xf32, #tpu.memory_space<vmem>>, vector<8x256xf32>
    %c7 = arith.constant 7 : index
    %c0_34 = arith.constant 0 : index
    %51 = vector.load %arg6[%c7, %c0_34] : memref<9x256xf32, #tpu.memory_space<vmem>>, vector<1x256xf32>
    %52 = vector.broadcast %51 : vector<1x256xf32> to vector<8x256xf32>
    %53 = arith.mulf %50, %52 : vector<8x256xf32>
    %c0_35 = arith.constant 0 : index
    %c34 = arith.constant 34 : index
    %54 = vector.load %arg8[%c0_35, %c34] : memref<8x290xf32, #tpu.memory_space<vmem>>, vector<8x256xf32>
    %c8 = arith.constant 8 : index
    %c0_36 = arith.constant 0 : index
    %55 = vector.load %arg6[%c8, %c0_36] : memref<9x256xf32, #tpu.memory_space<vmem>>, vector<1x256xf32>
    %56 = vector.broadcast %55 : vector<1x256xf32> to vector<8x256xf32>
    %57 = arith.mulf %54, %56 : vector<8x256xf32>
    %58 = tpu.concatenate %25, %29, %33, %37, %41, %45, %49, %53, %57 in 0 : vector<8x256xf32>, vector<8x256xf32>, vector<8x256xf32>, vector<8x256xf32>, vector<8x256xf32>, vector<8x256xf32>, vector<8x256xf32>, vector<8x256xf32>, vector<8x256xf32> -> vector<72x256xf32>
    %59 = arith.truncf %58 : vector<72x256xf32> to vector<72x256xbf16>
    %c0_37 = arith.constant 0 : index
    %c0_38 = arith.constant 0 : index
    %60 = vector.load %arg3[%c0_37, %c0_38] : memref<8x72xbf16, #tpu.memory_space<vmem>>, vector<8x72xbf16>
    %cst_39 = arith.constant dense<0.000000e+00> : vector<8x256xf32>
    %61 = tpu.matmul %60, %59, %cst_39 {dimension_numbers = #tpu.dot_dimension_numbers<[1], [0], [0], [1], [0, 0, 1, 1], [], []>} : vector<8x72xbf16>, vector<72x256xbf16>, vector<8x256xf32> -> vector<8x256xf32>
    %c0_40 = arith.constant 0 : index
    %c0_41 = arith.constant 0 : index
    %c0_42 = arith.constant 0 : index
    %62 = vector.load %arg5[%c0_40, %c0_41, %c0_42] : memref<1x8x4xf32, #tpu.memory_space<vmem>>, vector<1x8x4xf32>
    %63 = vector.shape_cast %62 : vector<1x8x4xf32> to vector<8x4xf32>
    %64 = vector.extract_strided_slice %63 {offsets = [0, 2], sizes = [8, 1], strides = [1, 1]} : vector<8x4xf32> to vector<8x1xf32>
    %65 = vector.extract_strided_slice %63 {offsets = [0, 0], sizes = [8, 1], strides = [1, 1]} : vector<8x4xf32> to vector<8x1xf32>
    %66 = arith.divf %64, %65 : vector<8x1xf32>
    %67 = vector.extract_strided_slice %63 {offsets = [0, 3], sizes = [8, 1], strides = [1, 1]} : vector<8x4xf32> to vector<8x1xf32>
    %68 = vector.extract_strided_slice %63 {offsets = [0, 1], sizes = [8, 1], strides = [1, 1]} : vector<8x4xf32> to vector<8x1xf32>
    %69 = arith.mulf %68, %66 : vector<8x1xf32>
    %70 = arith.subf %67, %69 : vector<8x1xf32>
    %71 = vector.broadcast %66 : vector<8x1xf32> to vector<8x256xf32>
    %72 = arith.mulf %61, %71 : vector<8x256xf32>
    %73 = vector.broadcast %70 : vector<8x1xf32> to vector<8x256xf32>
    %74 = arith.addf %72, %73 : vector<8x256xf32>
    %75 = vector.broadcast %2 : f32 to vector<8x256xf32>
    %76 = arith.addf %74, %75 : vector<8x256xf32>
    %cst_43 = arith.constant 0.000000e+00 : f32
    %77 = vector.broadcast %cst_43 : f32 to vector<8x256xf32>
    %78 = arith.cmpf oge, %76, %77 : vector<8x256xf32>
    %79 = vector.broadcast %5 : f32 to vector<8x256xf32>
    %80 = arith.mulf %79, %76 : vector<8x256xf32>
    %81 = arith.select %78, %76, %80 : vector<8x256xi1>, vector<8x256xf32>
    %82 = vector.broadcast %3 : f32 to vector<8x256xf32>
    %83 = arith.addf %81, %82 : vector<8x256xf32>
    %c0_44 = arith.constant 0 : index
    %c17_45 = arith.constant 17 : index
    %84 = vector.load %arg8[%c0_44, %c17_45] : memref<8x290xf32, #tpu.memory_space<vmem>>, vector<8x256xf32>
    tpu.vector_store %arg8[%c0_44, %c17_45], %83 {strides = array<i32>} : memref<8x290xf32, #tpu.memory_space<vmem>>, vector<8x256xf32>,
    %c0_46 = arith.constant 0 : index
    %c0_47 = arith.constant 0 : index
    %85 = vector.load %arg8[%c0_46, %c0_47] : memref<8x290xf32, #tpu.memory_space<vmem>>, vector<8x256xf32>
    %c0_48 = arith.constant 0 : index
    %c0_49 = arith.constant 0 : index
    %86 = vector.load %arg6[%c0_48, %c0_49] : memref<9x256xf32, #tpu.memory_space<vmem>>, vector<1x256xf32>
    %87 = vector.broadcast %86 : vector<1x256xf32> to vector<8x256xf32>
    %88 = arith.mulf %85, %87 : vector<8x256xf32>
    %c0_50 = arith.constant 0 : index
    %c1_51 = arith.constant 1 : index
    %89 = vector.load %arg8[%c0_50, %c1_51] : memref<8x290xf32, #tpu.memory_space<vmem>>, vector<8x256xf32>
    %c1_52 = arith.constant 1 : index
    %c0_53 = arith.constant 0 : index
    %90 = vector.load %arg6[%c1_52, %c0_53] : memref<9x256xf32, #tpu.memory_space<vmem>>, vector<1x256xf32>
    %91 = vector.broadcast %90 : vector<1x256xf32> to vector<8x256xf32>
    %92 = arith.mulf %89, %91 : vector<8x256xf32>
    %c0_54 = arith.constant 0 : index
    %c2_55 = arith.constant 2 : index
    %93 = vector.load %arg8[%c0_54, %c2_55] : memref<8x290xf32, #tpu.memory_space<vmem>>, vector<8x256xf32>
    %c2_56 = arith.constant 2 : index
    %c0_57 = arith.constant 0 : index
    %94 = vector.load %arg6[%c2_56, %c0_57] : memref<9x256xf32, #tpu.memory_space<vmem>>, vector<1x256xf32>
    %95 = vector.broadcast %94 : vector<1x256xf32> to vector<8x256xf32>
    %96 = arith.mulf %93, %95 : vector<8x256xf32>
    %c0_58 = arith.constant 0 : index
    %c16_59 = arith.constant 16 : index
    %97 = vector.load %arg8[%c0_58, %c16_59] : memref<8x290xf32, #tpu.memory_space<vmem>>, vector<8x256xf32>
    %c3_60 = arith.constant 3 : index
    %c0_61 = arith.constant 0 : index
    %98 = vector.load %arg6[%c3_60, %c0_61] : memref<9x256xf32, #tpu.memory_space<vmem>>, vector<1x256xf32>
    %99 = vector.broadcast %98 : vector<1x256xf32> to vector<8x256xf32>
    %100 = arith.mulf %97, %99 : vector<8x256xf32>
    %c0_62 = arith.constant 0 : index
    %c17_63 = arith.constant 17 : index
    %101 = vector.load %arg8[%c0_62, %c17_63] : memref<8x290xf32, #tpu.memory_space<vmem>>, vector<8x256xf32>
    %c4_64 = arith.constant 4 : index
    %c0_65 = arith.constant 0 : index
    %102 = vector.load %arg6[%c4_64, %c0_65] : memref<9x256xf32, #tpu.memory_space<vmem>>, vector<1x256xf32>
    %103 = vector.broadcast %102 : vector<1x256xf32> to vector<8x256xf32>
    %104 = arith.mulf %101, %103 : vector<8x256xf32>
    %c0_66 = arith.constant 0 : index
    %c18_67 = arith.constant 18 : index
    %105 = vector.load %arg8[%c0_66, %c18_67] : memref<8x290xf32, #tpu.memory_space<vmem>>, vector<8x256xf32>
    %c5_68 = arith.constant 5 : index
    %c0_69 = arith.constant 0 : index
    %106 = vector.load %arg6[%c5_68, %c0_69] : memref<9x256xf32, #tpu.memory_space<vmem>>, vector<1x256xf32>
    %107 = vector.broadcast %106 : vector<1x256xf32> to vector<8x256xf32>
    %108 = arith.mulf %105, %107 : vector<8x256xf32>
    %c0_70 = arith.constant 0 : index
    %c32_71 = arith.constant 32 : index
    %109 = vector.load %arg8[%c0_70, %c32_71] : memref<8x290xf32, #tpu.memory_space<vmem>>, vector<8x256xf32>
    %c6_72 = arith.constant 6 : index
    %c0_73 = arith.constant 0 : index
    %110 = vector.load %arg6[%c6_72, %c0_73] : memref<9x256xf32, #tpu.memory_space<vmem>>, vector<1x256xf32>
    %111 = vector.broadcast %110 : vector<1x256xf32> to vector<8x256xf32>
    %112 = arith.mulf %109, %111 : vector<8x256xf32>
    %c0_74 = arith.constant 0 : index
    %c33_75 = arith.constant 33 : index
    %113 = vector.load %arg8[%c0_74, %c33_75] : memref<8x290xf32, #tpu.memory_space<vmem>>, vector<8x256xf32>
    %c7_76 = arith.constant 7 : index
    %c0_77 = arith.constant 0 : index
    %114 = vector.load %arg6[%c7_76, %c0_77] : memref<9x256xf32, #tpu.memory_space<vmem>>, vector<1x256xf32>
    %115 = vector.broadcast %114 : vector<1x256xf32> to vector<8x256xf32>
    %116 = arith.mulf %113, %115 : vector<8x256xf32>
    %c0_78 = arith.constant 0 : index
    %c34_79 = arith.constant 34 : index
    %117 = vector.load %arg8[%c0_78, %c34_79] : memref<8x290xf32, #tpu.memory_space<vmem>>, vector<8x256xf32>
    %c8_80 = arith.constant 8 : index
    %c0_81 = arith.constant 0 : index
    %118 = vector.load %arg6[%c8_80, %c0_81] : memref<9x256xf32, #tpu.memory_space<vmem>>, vector<1x256xf32>
    %119 = vector.broadcast %118 : vector<1x256xf32> to vector<8x256xf32>
    %120 = arith.mulf %117, %119 : vector<8x256xf32>
    %121 = tpu.concatenate %88, %92, %96, %100, %104, %108, %112, %116, %120 in 0 : vector<8x256xf32>, vector<8x256xf32>, vector<8x256xf32>, vector<8x256xf32>, vector<8x256xf32>, vector<8x256xf32>, vector<8x256xf32>, vector<8x256xf32>, vector<8x256xf32> -> vector<72x256xf32>
    %122 = arith.truncf %121 : vector<72x256xf32> to vector<72x256xbf16>
    %c0_82 = arith.constant 0 : index
    %c0_83 = arith.constant 0 : index
    %123 = vector.load %arg4[%c0_82, %c0_83] : memref<8x72xbf16, #tpu.memory_space<vmem>>, vector<8x72xbf16>
    %cst_84 = arith.constant dense<0.000000e+00> : vector<8x256xf32>
    %124 = tpu.matmul %123, %122, %cst_84 {dimension_numbers = #tpu.dot_dimension_numbers<[1], [0], [0], [1], [0, 0, 1, 1], [], []>} : vector<8x72xbf16>, vector<72x256xbf16>, vector<8x256xf32> -> vector<8x256xf32>
    %125 = vector.broadcast %6 : f32 to vector<8x256xf32>
    %126 = arith.mulf %124, %125 : vector<8x256xf32>
    %c0_85 = arith.constant 0 : index
    %c0_86 = arith.constant 0 : index
    %c0_87 = arith.constant 0 : index
    %127 = vector.load %arg2[%c0_85, %c0_86, %c0_87] : memref<1x8x256xf32, #tpu.memory_space<vmem>>, vector<1x8x256xf32>
    %128 = vector.shape_cast %127 : vector<1x8x256xf32> to vector<8x256xf32>
    %129 = arith.addf %126, %128 : vector<8x256xf32>
    %c0_88 = arith.constant 0 : index
    %c0_89 = arith.constant 0 : index
    %c0_90 = arith.constant 0 : index
    %130 = vector.load %arg7[%c0_88, %c0_89, %c0_90] : memref<1x8x256xf32, #tpu.memory_space<vmem>>, vector<1x8x256xf32>
    %131 = vector.shape_cast %130 : vector<1x8x256xf32> to vector<8x256xf32>
    %132 = vector.shape_cast %129 : vector<8x256xf32> to vector<1x8x256xf32>
    tpu.vector_store %arg7[%c0_88, %c0_89, %c0_90], %132 {strides = array<i32>} : memref<1x8x256xf32, #tpu.memory_space<vmem>>, vector<1x8x256xf32>,
    return
  }
  func.func @transform_0(%arg0: i32) -> i32 {
    %c0_i32 = arith.constant 0 : i32
    %c0_i32_0 = arith.constant 0 : i32
    return %c0_i32 : i32
  }
  func.func @transform_1(%arg0: i32) -> (i32, i32, i32) {
    %c0_i32 = arith.constant 0 : i32
    %c0_i32_0 = arith.constant 0 : i32
    %c0_i32_1 = arith.constant 0 : i32
    return %arg0, %c0_i32, %c0_i32_0 : i32, i32, i32
  }
  func.func @transform_2(%arg0: i32) -> (i32, i32) {
    %c0_i32 = arith.constant 0 : i32
    %c0_i32_0 = arith.constant 0 : i32
    %c0_i32_1 = arith.constant 0 : i32
    return %c0_i32, %c0_i32_0 : i32, i32
  }
  func.func @transform_3(%arg0: i32) -> (i32, i32) {
    %c0_i32 = arith.constant 0 : i32
    %c0_i32_0 = arith.constant 0 : i32
    %c0_i32_1 = arith.constant 0 : i32
    return %c0_i32, %c0_i32_0 : i32, i32
  }
  func.func @transform_4(%arg0: i32) -> (i32, i32, i32) {
    %c0_i32 = arith.constant 0 : i32
    %c0_i32_0 = arith.constant 0 : i32
    %c0_i32_1 = arith.constant 0 : i32
    return %arg0, %c0_i32, %c0_i32_0 : i32, i32, i32
  }
  func.func @transform_5(%arg0: i32) -> (i32, i32) {
    %c0_i32 = arith.constant 0 : i32
    %c0_i32_0 = arith.constant 0 : i32
    %c0_i32_1 = arith.constant 0 : i32
    return %c0_i32, %c0_i32_0 : i32, i32
  }
  func.func @transform_6(%arg0: i32) -> (i32, i32, i32) {
    %c0_i32 = arith.constant 0 : i32
    %c0_i32_0 = arith.constant 0 : i32
    %c0_i32_1 = arith.constant 0 : i32
    return %arg0, %c0_i32, %c0_i32_0 : i32, i32, i32
  }
}

</mosaic_0001>

<bundles_post_ra>
// kernel: dual_adain_resblk.1
= control target key start
LH: loop header
LB: loop body
LE: loop exit
PB: predicated region body
PF: predicated region fallthrough
CT: control target
= control target key end

     0   :  { %11 = vsyncpa [#allocation4], 0  ;;  %s1441_s21 = smov 0   ;;  %s1794_s0 = inlined_call_operand.vmem [shape: f32[8], index: 0, kind: input, shape index: {}]   ;;  %s1795_s1 = inlined_call_operand.vmem [shape: f32[2,8,256], index: 1, kind: input, shape index: {}]   ;;  %s1796_s2 = inlined_call_operand.vmem [shape: bf16[8,72], index: 2, kind: input, shape index: {}]   ;;  %s1797_s3 = inlined_call_operand.vmem [shape: bf16[8,72], index: 3, kind: input, shape index: {}]   ;;  %s1798_s4 = inlined_call_operand.vmem [shape: f32[2,8,4], index: 4, kind: input, shape index: {}]   ;;  %s1799_s5 = inlined_call_operand.vmem [shape: f32[9,256], index: 5, kind: input, shape index: {}]   ;;  %s1800_s6 = inlined_call_operand.vmem [shape: f32[2,8,256], index: 6, kind: output, shape index: {}]  }
   0x1 LB: > { %s1447_s22 = sadd.s32 4294967295, %s1383_s21   ;;  %p1195_p0 = scmp.ge.s32.totalorder %s1383_s21, 1  ;;  %s1383_s21 = sphi %s1441_s21, %s17_s21  }
   0x2   : > { %p184_p1 = scmp.lt.s32.totalorder %s1383_s21, 3  ;;  %s197_s25 = sshll.u32 %s1794_s0, 4  ;;  %s198_s25 = int_to_ptr.vmem [resolvable:$true] %s197_s25 }
   0x3   : > { %p1243_p3 = scmp.eq.s32.totalorder %s1447_s22, 0  ;;  %s1358_s27 = scalar_lea.vmem %s198_s25, 16 }
   0x4   : > { %p1454_p2 = pnand %p1195_p0, %p184_p1  ;;  %p1359_p6 = scmp.ne.s32.totalorder %s198_s25, %s1358_s27 }
   0x5   : > { %p1366_p10 = scmp.lt.s32.totalorder %s198_s25, %s198_s25  ;;  %p1367_p11 = scmp.lt.s32.totalorder %s1358_s27, %s1358_s27 }
   0x6   : > { %p1239_p4 = pneg %p1454_p2 }
   0x7   : > { %p1368_p12 = por %p1367_p11, %p1366_p10 }
   0x8   : > { %p1240_p5 = pnand %p1243_p3, %p1239_p4 }
   0xa   : > { %p1360_p7 = pneg %p1240_p5 }
   0xc   : > { %p1361_p8 = pnand %p1360_p7, %p1359_p6 }
   0xe   : > { %p1362_p9 = pneg %p1361_p8 }
  0x10   : > { %p1369_p13 = pnand %p1368_p12, %p1362_p9 }
  0x12   : > { %1372 = shalt.err (!%p1369_p13)
}
  0x13   : > { %s1385_s28 = smov [#allocation3]   ;;  %234 = sbr.rel (%p1454_p2) target bundleno = 1178 (0x49a), region = 44 }
  0x14   : > { %1242 = dma.vmem_to_smem (!%p1240_p5), %s198_s25, 16, %s1385_s28, [#allocation4]  }
  0x18   : > { %1378 = dma.done.wait (%p1243_p3), [#allocation4], 16  }
  0x19   : > { %1380 = vsyncadd (%p1243_p3), [#allocation4], 4294967280 }
  0x1a   : > { %240 = sfence }
  0x1b   : > { %v328_v0 = vlaneseq  ;;  %v1218_v1 = vld [vmem:[%s1799_s5 + $0x10] ss:$8 sm:$0x3]  ;;  %p269_p0 = scmp.lt.s32.totalorder %s1447_s22, 1  ;;  %s284_s7 = sld [smem:[#allocation3]]  ;;  %vm291_vm0 = vcmask 138240  }
  0x1c   : > { %s1473_s8 = sld [smem:[#allocation3 + $0x1]]  ;;  %v1216_v3 = vld [vmem:[%s1799_s5 + $0x6] ss:$8 sm:$0x3]  ;;  %v1386_v4 = vmov 0.0   ;;  %vm293_vm1 = vcmask 277640  }
  0x1d   : > { %v329_v2 = vshrl.u32 %v328_v0, 7  ;;  %s1817_s22 = smov (!%p269_p0, %s1447_s22), 1  ;;  %292 = vst.msk [vmem:[#allocation2] sm:$0xff] %vm291_vm0, %v1386_v4  ;;  %s1208_s11 = sld [smem:[#allocation3 + $0x4]]  ;;  %vm320_vm4 = vcmask 1047688   ;;  %vm516_vm5 = vcmask 277504  }
  0x1e   : > { %s1233_s12 = sshll.u32 %s1817_s22, 4  ;;  %294 = vst.msk [vmem:[#allocation2 + $0x10] sm:$0xff] %vm293_vm1, %v1386_v4  ;;  %s1387_s16 = smov 34   ;;  %v1217_v22 = vld [vmem:[%s1799_s5 + $0x7] ss:$8 sm:$0x3] }
  0x1f   : > { %v1482_v5 = vsub.s32 0, %v329_v2  ;;  %v1484_v6 = vsub.s32 1, %v329_v2  ;;  %s273_s15 = scalar_lea.vmem %s1795_s1, %s1233_s12  ;;  %s1388_s17 = smov 32   ;;  %v1214_v26 = vld [vmem:[%s1799_s5 + $0x4] ss:$8 sm:$0x3] }
  0x20   : > { %v1494_v9 = vld [vmem:[%s273_s15] sm:$0xff]  ;;  %v1496_v11 = vld [vmem:[%s273_s15 + $0x8] sm:$0xff]  ;;  %s1389_s20 = smov 17   ;;  %s1390_s25 = smov 33   ;;  %vm493_vm6 = vcmask 269312   ;;  %vm447_vm7 = vcmask 146432  }
  0x21   : > { %v507_v7 = vrot.slane %v1218_v1, %v1482_v5  ;;  %v461_v8 = vrot.slane %v1216_v3, %v1482_v5  ;;  %v297_v10 = vstv %s284_s7  ;;  %v511_v12 = vrot.slane %v1218_v1, %v1484_v6  ;;  %v1215_v29 = vld [vmem:[%s1799_s5 + $0x5] ss:$8 sm:$0x3]  ;;  %v1212_v32 = vld [vmem:[%s1799_s5 + $0x2] ss:$8 sm:$0x3] }
  0x22   : > { %v298_v13 = vadd.f32 %v297_v10, %v1494_v9  ;;  %v299_v14 = vadd.f32 %v297_v10, %v1496_v11  ;;  %v307_v17 = vstv %s1473_s8  ;;  %v465_v19 = vrot.slane %v1216_v3, %v1484_v6  ;;  %s1391_s30 = smov 18   ;;  %v1213_v35 = vld [vmem:[%s1799_s5 + $0x3] ss:$8 sm:$0x3]  ;;  %s1392_s9 = smov 2  }
  0x23   : > { %512 = vrot.lane.b32.xlu1 %v507_v7, %s1387_s16  ;;  %466 = vrot.lane.b32.xlu0 %v461_v8, %s1388_s17  ;;  %v302_v15 = vstv %s1208_s11  ;;  %v488_v25 = vrot.slane %v1217_v22, %v1484_v6  ;;  %v484_v27 = vrot.slane %v1217_v22, %v1482_v5  ;;  %v420_v28 = vrot.slane %v1214_v26, %v1484_v6  ;;  %v1211_v38 = vld [vmem:[%s1799_s5 + $0x1] ss:$8 sm:$0x3]  ;;  %s1393_s13 = smov 16   ;;  %s1394_s14 = smov 1  }
  0x24   : > { %vm300_vm2 = vcmp.ge.f32.partialorder %v298_v13, 0.0  ;;  %vm301_vm3 = vcmp.ge.f32.partialorder %v299_v14, 0.0  ;;  %v303_v16 = vmul.f32 %v302_v15, %v298_v13  ;;  %v304_v18 = vmul.f32 %v302_v15, %v299_v14  ;;  %s1395_s15 = smov 96   ;;  %s1396_s18 = smov 111  }
  0x25   : > { %v416_v30 = vrot.slane %v1214_v26, %v1482_v5  ;;  %v442_v31 = vrot.slane %v1215_v29, %v1484_v6  ;;  %v438_v33 = vrot.slane %v1215_v29, %v1482_v5  ;;  %v374_v34 = vrot.slane %v1212_v32, %v1484_v6  ;;  %s1397_s19 = smov 94   ;;  %s1398_s23 = smov 95  }
  0x26   : > { %v305_v20 = vsel %vm300_vm2, %v298_v13, %v303_v16  ;;  %v306_v21 = vsel %vm301_vm3, %v299_v14, %v304_v18  ;;  %v370_v36 = vrot.slane %v1212_v32, %v1482_v5  ;;  %v397_v37 = vrot.slane %v1213_v35, %v1484_v6  ;;  %s1399_s24 = smov 126   ;;  %s1400_s26 = smov 110  }
  0x27   : > { %514 = vrot.lane.b32.xlu1 %v511_v12, %s1387_s16  ;;  %v308_v23 = vadd.f32 %v307_v17, %v305_v20  ;;  %v309_v24 = vadd.f32 %v307_v17, %v306_v21  ;;  %v393_v39 = vrot.slane %v1213_v35, %v1482_v5  ;;  %v351_v40 = vrot.slane %v1211_v38, %v1484_v6  ;;  %s1401_s27 = smov 112   ;;  %s1202_s28 = sshll.u32 %s1817_s22, 3 }
  0x28   : > { %v347_v41 = vrot.slane %v1211_v38, %v1482_v5  ;;  %vm470_vm8 = vcmask 261120   ;;  %vm402_vm9 = vcmask 130048   ;;  %vm379_vm10 = vcmask 15360   ;;  %s277_s8 = scalar_lea.vmem %s1798_s4, %s1202_s28  ;;  %s1403_s10 = smov 127  }
  0x29   : > { %312 = vrot.lane.b32.xlu0 %v308_v23, %s1389_s20  ;;  %vm356_vm11 = vcmask 7168   ;;  %vm631_vm12 = vcmask 769024   ;;  %vm651_vm13 = vcmask 1043456   ;;  %vm603_vm14 = vcmask 785408   ;;  %s1209_s7 = sld [smem:[#allocation3 + $0x5]] }
  0x2a   : > { %vm1801_vm15 = vcmask 777216   ;;  %vm1802_vm1 = vcmask 900096   ;;  %vm575_vm2 = vcmask 908288   ;;  %vm1803_vm3 = vcmask 916480  }
  0x2b   : > { %468 = vrot.lane.b32.xlu1 %v465_v19, %s1388_s17 }
  0x2d   : > { %314 = vrot.lane.b32.xlu0 %v309_v24, %s1389_s20 }
  0x2f   : > { %491 = vrot.lane.b32.xlu1 %v488_v25, %s1390_s25 }
  0x31   : > { %489 = vrot.lane.b32.xlu0 %v484_v27, %s1390_s25 }
  0x33   : > { %423 = vrot.lane.b32.xlu1 %v420_v28, %s1389_s20 }
  0x35   : > { %421 = vrot.lane.b32.xlu0 %v416_v30, %s1389_s20 }
  0x37   : > { %445 = vrot.lane.b32.xlu1 %v442_v31, %s1391_s30 }
  0x39   : > { %443 = vrot.lane.b32.xlu0 %v438_v33, %s1391_s30 }
  0x3b   : > { %377 = vrot.lane.b32.xlu1 %v374_v34, %s1392_s9 }
  0x3d   : > { %375 = vrot.lane.b32.xlu0 %v370_v36, %s1392_s9 }
  0x3f   : > { %400 = vrot.lane.b32.xlu1 %v397_v37, %s1393_s13 }
  0x41   : > { %398 = vrot.lane.b32.xlu0 %v393_v39, %s1393_s13  ;;  %v1402_v39 = vmov 0  }
  0x42   : > { %690 = vmatprep.mubr.bf16.mxu0 %v1402_v39  ;;  %1096 = vmatprep.mubr.bf16.mxu1 %v1402_v39 }
  0x43   : > { %354 = vrot.lane.b32.xlu1 %v351_v40, %s1394_s14 }
  0x45   : > { %352 = vrot.lane.b32.xlu0 %v347_v41, %s1394_s14 }
  0x95   : > { %v513_v42 = vpop.permute.xlu1 %512  ;;  %v467_v43 = vpop.permute.xlu0 %466 }
  0x99   : > { %v515_v44 = vpop.permute.xlu1 %514 }
  0x9a   : > { %v517_v60 = vsel %vm516_vm5, %v513_v42, %v515_v44 }
  0x9b   : > { %v313_v45 = vpop.permute.xlu0 %312 }
  0x9c   : > { %321 = vst.msk [vmem:[#allocation2] sm:$0xff] %vm320_vm4, %v313_v45 }
  0x9d   : > { %v469_v46 = vpop.permute.xlu1 %468 }
  0x9e   : > { %v471_v15 = vsel %vm470_vm8, %v467_v43, %v469_v46 }
  0x9f   : > { %v315_v47 = vpop.permute.xlu0 %314 }
  0xa0   : > { %323 = vst.msk [vmem:[#allocation2 + $0x10] sm:$0xff] %vm291_vm0, %v315_v47  ;;  %v1566_v61 = vsel %vm291_vm0, %v313_v45, %v315_v47  ;;  %v1404_v45 = vmov 2  }
  0xa1   : > { %v492_v48 = vpop.permute.xlu1 %491  ;;  %v522_v8 = vmul.f32 %v517_v60, %v1566_v61  ;;  %v476_v21 = vmul.f32 %v471_v15, %v1566_v61  ;;  %1314 = vset.pattern.permute.xlu1 %v1404_v45 }
  0xa3   : > { %v1553_v49 = vld [vmem:[#allocation2] sm:$0xff]  ;;  %v490_v50 = vpop.permute.xlu0 %489 }
  0xa4   : > { %v475_v52 = vmul.f32 %v467_v43, %v1553_v49  ;;  %v498_v59 = vmul.f32 %v490_v50, %v1553_v49  ;;  %v494_v0 = vsel %vm493_vm6, %v490_v50, %v492_v48  ;;  %v521_v2 = vmul.f32 %v513_v42, %v1553_v49 }
  0xa5   : > { %v424_v51 = vpop.permute.xlu1 %423  ;;  %v499_v10 = vmul.f32 %v494_v0, %v1566_v61 }
  0xa6   : > { %597 = vrot.lane.b32.xlu0 %v475_v52, %s1395_s15  ;;  %v1274_v13 = vpack.i.bf16 %v522_v8, %v521_v2 }
  0xa7   : > { %v1557_v53 = vld [vmem:[#allocation2 + $0x10] sm:$0xff]  ;;  %v422_v54 = vpop.permute.xlu0 %421 }
  0xa8   : > { %v429_v55 = vmul.f32 %v422_v54, %v1553_v49  ;;  %v523_v57 = vmul.f32 %v515_v44, %v1557_v53  ;;  %v500_v3 = vmul.f32 %v492_v48, %v1557_v53  ;;  %v477_v14 = vmul.f32 %v469_v46, %v1557_v53  ;;  %v1612_v44 = vld [vmem:[%s277_s8] sm:$0xff] }
  0xa9   : > { %v446_v56 = vpop.permute.xlu1 %445  ;;  %v425_v16 = vsel %vm291_vm0, %v422_v54, %v424_v51  ;;  %v431_v23 = vmul.f32 %v424_v51, %v1557_v53 }
  0xaa   : > { %569 = vrot.lane.b32.xlu0 %v429_v55, %s1396_s18  ;;  %629 = vrot.lane.b32.xlu1 %v523_v57, %s1397_s19  ;;  %v1284_v19 = vpack.i.bf16 %v500_v3, %v499_v10  ;;  %v454_v22 = vmul.f32 %v446_v56, %v1557_v53  ;;  %v430_v24 = vmul.f32 %v425_v16, %v1566_v61 }
  0xab   : > { %v444_v58 = vpop.permute.xlu0 %443  ;;  %v1279_v25 = vpack.i.bf16 %v477_v14, %v476_v21 }
  0xac   : > { %v452_v4 = vmul.f32 %v444_v58, %v1553_v49  ;;  %v448_v7 = vsel %vm447_vm7, %v444_v58, %v446_v56  ;;  %v1289_v33 = vpack.i.bf16 %v431_v23, %v430_v24 }
  0xad   : > { %v378_v62 = vpop.permute.xlu1 %377  ;;  %v453_v17 = vmul.f32 %v448_v7, %v1566_v61 }
  0xae   : > { %611 = vrot.lane.b32.xlu1 %v498_v59, %s1398_s23  ;;  %v386_v36 = vmul.f32 %v378_v62, %v1557_v53 }
  0xaf   : > { %v376_v63 = vpop.permute.xlu0 %375  ;;  %v1294_v28 = vpack.i.bf16 %v454_v22, %v453_v17 }
  0xb0   : > { %v384_v1 = vmul.f32 %v376_v63, %v1553_v49  ;;  %v380_v26 = vsel %vm379_vm10, %v376_v63, %v378_v62 }
  0xb1   : > { %v401_v18 = vpop.permute.xlu1 %400  ;;  %v385_v31 = vmul.f32 %v380_v26, %v1566_v61 }
  0xb2   : > { %541 = vrot.lane.b32.xlu0 %v384_v1, %s1399_s24  ;;  %583 = vrot.lane.b32.xlu1 %v452_v4, %s1400_s26  ;;  %v409_v30 = vmul.f32 %v401_v18, %v1557_v53 }
  0xb3   : > { %v399_v12 = vpop.permute.xlu0 %398  ;;  %v1299_v38 = vpack.i.bf16 %v386_v36, %v385_v31 }
  0xb4   : > { %v403_v20 = vsel %vm402_vm9, %v399_v12, %v401_v18  ;;  %v407_v40 = vmul.f32 %v399_v12, %v1553_v49 }
  0xb5   : > { %v408_v27 = vmul.f32 %v403_v20, %v1566_v61  ;;  %v355_v32 = vpop.permute.xlu1 %354 }
  0xb6   : > { %1275 = vrot.lane.b32.xlu0 %v1274_v13, %s1397_s19  ;;  %1285 = vrot.lane.b32.xlu1 %v1284_v19, %s1398_s23  ;;  %v363_v41 = vmul.f32 %v355_v32, %v1557_v53 }
  0xb7   : > { %v353_v29 = vpop.permute.xlu0 %352  ;;  %v1304_v35 = vpack.i.bf16 %v409_v30, %v408_v27  ;;  %v326_v27 = vld [vmem:[%s1799_s5] ss:$8 sm:$0x3] }
  0xb8   : > { %v357_v34 = vsel %vm356_vm11, %v353_v29, %v355_v32  ;;  %v361_v43 = vmul.f32 %v353_v29, %v1553_v49 }
  0xb9   : > { %v362_v37 = vmul.f32 %v357_v34, %v1566_v61  ;;  %v335_v34 = vrot.slane %v326_v27, %v1484_v6 }
  0xba   : > { %1280 = vrot.lane.b32.xlu0 %v1279_v25, %s1395_s15  ;;  %1295 = vrot.lane.b32.xlu1 %v1294_v28, %s1400_s26 }
  0xbb   : > { %v1309_v42 = vpack.i.bf16 %v363_v41, %v362_v37 }
  0xbe   : > { %1290 = vrot.lane.b32.xlu0 %v1289_v33, %s1396_s18  ;;  %1305 = vrot.lane.b32.xlu1 %v1304_v35, %s1401_s27  ;;  %v331_v35 = vrot.slane %v326_v27, %v1482_v5 }
  0xc2   : > { %1300 = vrot.lane.b32.xlu0 %v1299_v38, %s1399_s24  ;;  %555 = vrot.lane.b32.xlu1 %v407_v40, %s1401_s27 }
  0xc6   : > { %1310 = vrot.lane.b32.xlu0 %v1309_v42, %s1403_s10  ;;  %527 = vrot.lane.b32.xlu1 %v361_v43, %s1403_s10 }
  0xca   : > { %701 = vrot.lane.b32.xlu0 %v1612_v44, %s1392_s9 }
 0x118   : > { %v598_v46 = vpop.permute.xlu0 %597 }
 0x11c   : > { %v630_v47 = vpop.permute.xlu1 %629  ;;  %v570_v48 = vpop.permute.xlu0 %569 }
 0x120   : > { %v612_v50 = vpop.permute.xlu1 %611 }
 0x124   : > { %v542_v51 = vpop.permute.xlu0 %541  ;;  %v584_v52 = vpop.permute.xlu1 %583 }
 0x128   : > { %v1276_v53 = vpop.permute.xlu0 %1275  ;;  %v1286_v54 = vpop.permute.xlu1 %1285 }
 0x129   : > { %v1278_v55 = vunpack.i.h.bf16 %v1276_v53  ;;  %v1277_v56 = vunpack.i.l.bf16 %v1276_v53  ;;  %v1288_v57 = vunpack.i.h.bf16 %v1286_v54  ;;  %v1287_v58 = vunpack.i.l.bf16 %v1286_v54 }
 0x12b   : > { %v633_v59 = vsel %vm631_vm12, %v1278_v55, %v630_v47  ;;  %v632_v60 = vsel %vm631_vm12, %v1277_v56, %v1278_v55  ;;  %v619_v12 = vsel %vm1801_vm15, %v1287_v58, %v1288_v57  ;;  %v618_v14 = vsel %vm1801_vm15, %v612_v50, %v1287_v58  ;;  %v646_v55 = vld [vmem:[%s1796_s2] sm:$0xf] }
 0x12c   : > { %v1281_v62 = vpop.permute.xlu0 %1280  ;;  %v645_v63 = vpack.c.bf16 %v633_v59, %v633_v59  ;;  %v644_v0 = vpack.c.bf16 %v632_v60, %v632_v60  ;;  %v1296_v1 = vpop.permute.xlu1 %1295  ;;  %vm547_vm15 = vcmask 1031168   ;;  %v339_v47 = vmul.f32 %v335_v34, %v1566_v61 }
 0x12d   : > { %v1283_v2 = vunpack.i.h.bf16 %v1281_v62  ;;  %v1282_v3 = vunpack.i.l.bf16 %v1281_v62  ;;  %v1298_v4 = vunpack.i.h.bf16 %v1296_v1  ;;  %v1297_v7 = vunpack.i.l.bf16 %v1296_v1 }
 0x12e   : > { %1219 = vmatprep.subr.msk.bf16.mxu0 %vm651_vm13, %v645_v63  ;;  %v653_v8 = vsel %vm651_vm13, %v644_v0, 0  ;;  %v1405_v56 = vmov 3   ;;  %v1228_v0 = vld [vmem:[%s1799_s5 + $0x10] ss:$8 sm:$0x3] }
 0x12f   : > { %665 = vmatpush1.bf16.msra.mxu0 %v653_v8  ;;  %v605_v10 = vsel %vm603_vm14, %v1282_v3, %v1283_v2  ;;  %v604_v13 = vsel %vm603_vm14, %v598_v46, %v1282_v3  ;;  %v591_v21 = vsel %vm1802_vm1, %v1297_v7, %v1298_v4  ;;  %v590_v22 = vsel %vm1802_vm1, %v584_v52, %v1297_v7  ;;  %v1226_v4 = vld [vmem:[%s1799_s5 + $0x6] ss:$8 sm:$0x3] }
 0x130   : > { %v1291_v15 = vpop.permute.xlu0 %1290  ;;  %v643_v16 = vpack.c.bf16 %v619_v12, %v605_v10  ;;  %v642_v17 = vpack.c.bf16 %v618_v14, %v604_v13  ;;  %v1306_v18 = vpop.permute.xlu1 %1305  ;;  %vm1805_vm1 = vcmask 1039360   ;;  %1315 = vset.pattern.permute.xlu0 %v1405_v56  ;;  %v928_v1 = vrot.slane %v1228_v0, %v1484_v6  ;;  %v1224_v13 = vld [vmem:[%s1799_s5 + $0x4] ss:$8 sm:$0x3] }
 0x131   : > { %v1293_v19 = vunpack.i.h.bf16 %v1291_v15  ;;  %v1292_v20 = vunpack.i.l.bf16 %v1291_v15  ;;  %v1308_v23 = vunpack.i.h.bf16 %v1306_v18  ;;  %v1307_v24 = vunpack.i.l.bf16 %v1306_v18  ;;  %v1225_v15 = vld [vmem:[%s1799_s5 + $0x5] ss:$8 sm:$0x3] }
 0x132   : > { %666 = vmatprep.subr.bf16.mxu0 %v643_v16  ;;  %v924_v7 = vrot.slane %v1228_v0, %v1482_v5  ;;  %v886_v8 = vrot.slane %v1226_v4, %v1484_v6  ;;  %v882_v10 = vrot.slane %v1226_v4, %v1482_v5  ;;  %v840_v14 = vrot.slane %v1224_v13, %v1482_v5 }
 0x133   : > { %667 = vmatpush1.bf16.msra.mxu0 %v642_v17  ;;  %v577_v25 = vsel %vm575_vm2, %v1292_v20, %v1293_v19  ;;  %v576_v26 = vsel %vm575_vm2, %v570_v48, %v1292_v20  ;;  %v563_v38 = vsel %vm1803_vm3, %v1307_v24, %v1308_v23  ;;  %v338_v48 = vmul.f32 %v331_v35, %v1553_v49  ;;  %v1222_v17 = vld [vmem:[%s1799_s5 + $0x2] ss:$8 sm:$0x3]  ;;  %v1223_v19 = vld [vmem:[%s1799_s5 + $0x3] ss:$8 sm:$0x3] }
 0x134   : > { %v1301_v28 = vpop.permute.xlu0 %1300  ;;  %v641_v29 = vpack.c.bf16 %v591_v21, %v577_v25  ;;  %v640_v30 = vpack.c.bf16 %v590_v22, %v576_v26  ;;  %v556_v31 = vpop.permute.xlu1 %555  ;;  %v861_v16 = vrot.slane %v1225_v15, %v1482_v5  ;;  %v798_v18 = vrot.slane %v1222_v17, %v1482_v5  ;;  %v1221_v21 = vld [vmem:[%s1799_s5 + $0x1] ss:$8 sm:$0x3] }
 0x135   : > { %v1303_v32 = vunpack.i.h.bf16 %v1301_v28  ;;  %v1302_v33 = vunpack.i.l.bf16 %v1301_v28  ;;  %v562_v36 = vsel %vm1803_vm3, %v556_v31, %v1307_v24  ;;  %vm1804_vm3 = vcmask 588800  }
 0x136   : > { %668 = vmatprep.subr.bf16.mxu0 %v641_v29  ;;  %v819_v20 = vrot.slane %v1223_v19, %v1482_v5  ;;  %v777_v22 = vrot.slane %v1221_v21, %v1482_v5 }
 0x137   : > { %669 = vmatpush1.bf16.msra.mxu0 %v640_v30  ;;  %v549_v37 = vsel %vm547_vm15, %v1302_v33, %v1303_v32  ;;  %v548_v39 = vsel %vm547_vm15, %v542_v51, %v1302_v33  ;;  %v734_v30 = vstv %s1209_s7 }
 0x138   : > { %v1311_v40 = vpop.permute.xlu0 %1310  ;;  %v639_v41 = vpack.c.bf16 %v563_v38, %v549_v37  ;;  %v638_v42 = vpack.c.bf16 %v562_v36, %v548_v39  ;;  %v528_v46 = vpop.permute.xlu1 %527 }
 0x139   : > { %v1313_v43 = vunpack.i.h.bf16 %v1311_v40  ;;  %v1312_v45 = vunpack.i.l.bf16 %v1311_v40 }
 0x13a   : > { %670 = vmatprep.subr.bf16.mxu0 %v639_v41  ;;  %v844_v41 = vrot.slane %v1224_v13, %v1484_v6 }
 0x13b   : > { %671 = vmatpush1.bf16.msra.mxu0 %v638_v42  ;;  %v535_v50 = vsel %vm1805_vm1, %v1312_v45, %v1313_v43  ;;  %v534_v52 = vsel %vm1805_vm1, %v528_v46, %v1312_v45  ;;  %v865_v42 = vrot.slane %v1225_v15, %v1484_v6  ;;  %v802_v43 = vrot.slane %v1222_v17, %v1484_v6 }
 0x13c   : > { %v702_v53 = vpop.permute.xlu0 %701  ;;  %v637_v54 = vpack.c.bf16 %v535_v50, %v339_v47  ;;  %v636_v51 = vpack.c.bf16 %v534_v52, %v338_v48  ;;  %v823_v45 = vrot.slane %v1223_v19, %v1484_v6  ;;  %v781_v46 = vrot.slane %v1221_v21, %v1484_v6 }
 0x13d   : > { %1356 = vrcp.f32 %v702_v53 }
 0x13e   : > { %672 = vmatprep.subr.bf16.mxu0 %v637_v54 }
 0x13f   : > { %673 = vmatpush1.bf16.msra.mxu0 %v636_v51 }
 0x142   : > { %1220 = vmatmul.mubr.msk.bf16.vlgmr.msra.gmra.mxu0 %vm1804_vm3, %v646_v55 }
 0x14a   : > { %v1357_v61 = vpop.eup %1356 }
 0x14b   : > { %v705_v49 = vmul.f32 %v1357_v61, %v1612_v44 }
 0x14d   : > { %707 = vrot.lane.b32.xlu1 %v705_v49, %s1403_s10 }
 0x151   : > { %717 = vperm.xlu1 %1314, %v705_v49  }
 0x155   : > { %931 = vrot.lane.b32.xlu1 %v928_v1, %s1387_s16 }
 0x159   : > { %889 = vrot.lane.b32.xlu1 %v886_v8, %s1388_s17 }
 0x1bf   : > { %v708_v57 = vpop.permute.xlu1 %707 }
 0x1c0   : > { %v710_v58 = vmul.f32 %v708_v57, %v1612_v44 }
 0x1c2   : > { %712 = vrot.lane.b32.xlu0 %v710_v58, %s1392_s9 }
 0x1cc   : > { %v718_v23 = vpop.permute.xlu1 %717 }
 0x1d0   : > { %v932_v48 = vpop.permute.xlu1 %931 }
 0x1d4   : > { %v890_v52 = vpop.permute.xlu1 %889 }
 0x202   : > { %v692_v59 = vpop.f32.mrf.mxu0 }
 0x203   : > { %v720_v24 = vmul.f32 %v718_v23, %v692_v59 }
 0x204   : > { %v694_v60 = vpop.f32.mrf.mxu0 }
 0x205   : > { %v721_v25 = vmul.f32 %v718_v23, %v694_v60 }
 0x206   : > { %v696_v62 = vpop.f32.mrf.mxu0 }
 0x208   : > { %v697_v63 = vpop.f32.mrf.mxu0 }
 0x234   : > { %v713_v2 = vpop.permute.xlu0 %712 }
 0x235   : > { %v715_v3 = vsub.f32 %v1612_v44, %v713_v2  ;;  %v1227_v44 = vld [vmem:[%s1799_s5 + $0x7] ss:$8 sm:$0x3] }
 0x236   : > { %v903_v12 = vrot.slane %v1227_v44, %v1482_v5  ;;  %v907_v40 = vrot.slane %v1227_v44, %v1484_v6 }
 0x237   : > { %724 = vperm.xlu0 %1315, %v715_v3  }
 0x23b   : > { %929 = vrot.lane.b32.xlu0 %v924_v7, %s1387_s16  ;;  %s1206_s16 = sld [smem:[#allocation3 + $0x2]] }
 0x23f   : > { %887 = vrot.lane.b32.xlu0 %v882_v10, %s1388_s17  ;;  %s1207_s17 = sld [smem:[#allocation3 + $0x3]] }
 0x241   : > { %v729_v26 = vstv %s1206_s16 }
 0x243   : > { %908 = vrot.lane.b32.xlu0 %v903_v12, %s1390_s25 }
 0x245   : > { %v739_v35 = vstv %s1207_s17 }
 0x247   : > { %845 = vrot.lane.b32.xlu0 %v840_v14, %s1389_s20 }
 0x24b   : > { %866 = vrot.lane.b32.xlu0 %v861_v16, %s1391_s30 }
 0x24f   : > { %803 = vrot.lane.b32.xlu0 %v798_v18, %s1392_s9 }
 0x253   : > { %824 = vrot.lane.b32.xlu0 %v819_v20, %s1393_s13 }
 0x257   : > { %782 = vrot.lane.b32.xlu0 %v777_v22, %s1394_s14 }
 0x2b2   : > { %v725_v27 = vpop.permute.xlu0 %724 }
 0x2b3   : > { %v727_v28 = vadd.f32 %v725_v27, %v720_v24  ;;  %v728_v29 = vadd.f32 %v725_v27, %v721_v25 }
 0x2b5   : > { %v730_v31 = vadd.f32 %v729_v26, %v727_v28  ;;  %v731_v32 = vadd.f32 %v729_v26, %v728_v29 }
 0x2b6   : > { %v930_v47 = vpop.permute.xlu0 %929 }
 0x2b7   : > { %v735_v33 = vmul.f32 %v734_v30, %v730_v31  ;;  %v736_v34 = vmul.f32 %v734_v30, %v731_v32  ;;  %vm732_vm3 = vcmp.ge.f32.partialorder %v730_v31, 0.0  ;;  %vm733_vm1 = vcmp.ge.f32.partialorder %v731_v32, 0.0 }
 0x2b8   : > { %v933_v7 = vsel %vm516_vm5, %v930_v47, %v932_v48  ;;  %vm1809_vm5 = vcmask 900096  }
 0x2b9   : > { %v737_v36 = vsel %vm732_vm3, %v730_v31, %v735_v33  ;;  %v738_v38 = vsel %vm733_vm1, %v731_v32, %v736_v34 }
 0x2ba   : > { %v740_v37 = vadd.f32 %v739_v35, %v737_v36  ;;  %v741_v39 = vadd.f32 %v739_v35, %v738_v38  ;;  %v888_v50 = vpop.permute.xlu0 %887 }
 0x2bb   : > { %v891_v18 = vsel %vm470_vm8, %v888_v50, %v890_v52 }
 0x2bc   : > { %744 = vrot.lane.b32.xlu1 %v740_v37, %s1389_s20 }
 0x2be   : > { %v909_v53 = vpop.permute.xlu0 %908 }
 0x2c0   : > { %746 = vrot.lane.b32.xlu1 %v741_v39, %s1389_s20 }
 0x2c2   : > { %v846_v51 = vpop.permute.xlu0 %845 }
 0x2c4   : > { %910 = vrot.lane.b32.xlu1 %v907_v40, %s1390_s25 }
 0x2c6   : > { %v867_v58 = vpop.permute.xlu0 %866 }
 0x2c8   : > { %847 = vrot.lane.b32.xlu1 %v844_v41, %s1389_s20 }
 0x2ca   : > { %v804_v0 = vpop.permute.xlu0 %803 }
 0x2cc   : > { %868 = vrot.lane.b32.xlu1 %v865_v42, %s1391_s30 }
 0x2ce   : > { %v825_v19 = vpop.permute.xlu0 %824 }
 0x2d0   : > { %805 = vrot.lane.b32.xlu1 %v802_v43, %s1392_s9 }
 0x2d2   : > { %v783_v34 = vpop.permute.xlu0 %782 }
 0x2d4   : > { %826 = vrot.lane.b32.xlu1 %v823_v45, %s1393_s13  ;;  %s1210_s13 = sld [smem:[#allocation3 + $0x6]] }
 0x2d8   : > { %784 = vrot.lane.b32.xlu1 %v781_v46, %s1394_s14 }
 0x32e   : > { %v745_v54 = vpop.permute.xlu1 %744 }
 0x32f   : > { %752 = vst.msk [vmem:[#allocation2] sm:$0xff] %vm320_vm4, %v745_v54 }
 0x332   : > { %v747_v55 = vpop.permute.xlu1 %746 }
 0x333   : > { %v1710_v61 = vsel %vm291_vm0, %v745_v54, %v747_v55  ;;  %754 = vst.msk [vmem:[#allocation2 + $0x10] sm:$0xff] %vm291_vm0, %v747_v55 }
 0x334   : > { %v938_v8 = vmul.f32 %v933_v7, %v1710_v61  ;;  %v896_v21 = vmul.f32 %v891_v18, %v1710_v61 }
 0x336   : > { %v1713_v49 = vld [vmem:[#allocation2] sm:$0xff]  ;;  %v911_v56 = vpop.permute.xlu1 %910 }
 0x337   : > { %v895_v57 = vmul.f32 %v888_v50, %v1713_v49  ;;  %v853_v62 = vmul.f32 %v846_v51, %v1713_v49  ;;  %v811_v2 = vmul.f32 %v804_v0, %v1713_v49  ;;  %v916_v3 = vmul.f32 %v909_v53, %v1713_v49 }
 0x338   : > { %v937_v4 = vmul.f32 %v930_v47, %v1713_v49  ;;  %v912_v10 = vsel %vm493_vm6, %v909_v53, %v911_v56  ;;  %v874_v13 = vmul.f32 %v867_v58, %v1713_v49  ;;  %v832_v45 = vmul.f32 %v825_v19, %v1713_v49  ;;  %vm1810_vm6 = vmmov %vm1809_vm5 }
 0x339   : > { %1008 = vrot.lane.b32.xlu0 %v895_v57, %s1395_s15  ;;  %v917_v20 = vmul.f32 %v912_v10, %v1710_v61  ;;  %v790_v47 = vmul.f32 %v783_v34, %v1713_v49 }
 0x33a   : > { %v771_v59 = vld [vmem:[#allocation2 + $0x10] sm:$0xff]  ;;  %v848_v60 = vpop.permute.xlu1 %847  ;;  %v1316_v16 = vpack.i.bf16 %v938_v8, %v937_v4 }
 0x33b   : > { %v939_v63 = vmul.f32 %v932_v48, %v771_v59  ;;  %v918_v44 = vmul.f32 %v911_v56, %v771_v59  ;;  %v849_v14 = vsel %vm291_vm0, %v846_v51, %v848_v60  ;;  %v897_v17 = vmul.f32 %v890_v52, %v771_v59 }
 0x33c   : > { %v854_v22 = vmul.f32 %v849_v14, %v1710_v61  ;;  %v855_v23 = vmul.f32 %v848_v60, %v771_v59  ;;  %vm1807_vm0 = vcmask 777216  }
 0x33d   : > { %982 = vrot.lane.b32.xlu0 %v853_v62, %s1396_s18  ;;  %1038 = vrot.lane.b32.xlu1 %v939_v63, %s1397_s19  ;;  %v1326_v27 = vpack.i.bf16 %v918_v44, %v917_v20  ;;  %v1321_v28 = vpack.i.bf16 %v897_v17, %v896_v21  ;;  %vm1808_vm4 = vmmov %vm1807_vm0 }
 0x33e   : > { %v869_v1 = vpop.permute.xlu1 %868  ;;  %v1331_v31 = vpack.i.bf16 %v855_v23, %v854_v22 }
 0x33f   : > { %v870_v15 = vsel %vm447_vm7, %v867_v58, %v869_v1  ;;  %v876_v25 = vmul.f32 %v869_v1, %v771_v59  ;;  %vm1811_vm7 = vcmask 916480  }
 0x340   : > { %v875_v24 = vmul.f32 %v870_v15, %v1710_v61  ;;  %vm1812_vm8 = vmmov %vm1811_vm7 }
 0x341   : > { %956 = vrot.lane.b32.xlu0 %v811_v2, %s1399_s24  ;;  %1021 = vrot.lane.b32.xlu1 %v916_v3, %s1398_s23 }
 0x342   : > { %v806_v12 = vpop.permute.xlu1 %805  ;;  %v1336_v32 = vpack.i.bf16 %v876_v25, %v875_v24  ;;  %v757_v25 = vld [vmem:[%s1799_s5] ss:$8 sm:$0x3] }
 0x343   : > { %v807_v29 = vsel %vm379_vm10, %v804_v0, %v806_v12  ;;  %v813_v36 = vmul.f32 %v806_v12, %v771_v59 }
 0x344   : > { %v812_v35 = vmul.f32 %v807_v29, %v1710_v61 }
 0x345   : > { %995 = vrot.lane.b32.xlu1 %v874_v13, %s1400_s26  ;;  %1317 = vrot.lane.b32.xlu0 %v1316_v16, %s1397_s19 }
 0x346   : > { %v827_v26 = vpop.permute.xlu1 %826  ;;  %v1341_v40 = vpack.i.bf16 %v813_v36, %v812_v35 }
 0x347   : > { %v828_v30 = vsel %vm402_vm9, %v825_v19, %v827_v26  ;;  %v834_v38 = vmul.f32 %v827_v26, %v771_v59  ;;  %vm1813_vm9 = vcmask 1039360  }
 0x348   : > { %v833_v37 = vmul.f32 %v828_v30, %v1710_v61  ;;  %vm1814_vm10 = vmmov %vm1813_vm9 }
 0x349   : > { %1322 = vrot.lane.b32.xlu0 %v1321_v28, %s1395_s15  ;;  %1327 = vrot.lane.b32.xlu1 %v1326_v27, %s1398_s23 }
 0x34a   : > { %v785_v33 = vpop.permute.xlu1 %784  ;;  %v1346_v41 = vpack.i.bf16 %v834_v38, %v833_v37 }
 0x34b   : > { %v786_v39 = vsel %vm356_vm11, %v783_v34, %v785_v33  ;;  %v792_v43 = vmul.f32 %v785_v33, %v771_v59  ;;  %v766_v34 = vrot.slane %v757_v25, %v1484_v6  ;;  %vm1815_vm11 = vcmask 588800  }
 0x34c   : > { %v791_v42 = vmul.f32 %v786_v39, %v1710_v61 }
 0x34d   : > { %1332 = vrot.lane.b32.xlu0 %v1331_v31, %s1396_s18  ;;  %1337 = vrot.lane.b32.xlu1 %v1336_v32, %s1400_s26  ;;  %v770_v6 = vmul.f32 %v766_v34, %v1710_v61  ;;  %v1105_v61 = vstv %s1210_s13  ;;  %s282_s18 = scalar_lea.vmem %s1800_s6, %s1233_s12 }
 0x34e   : > { %v1351_v46 = vpack.i.bf16 %v792_v43, %v791_v42 }
 0x351   : > { %1342 = vrot.lane.b32.xlu0 %v1341_v40, %s1399_s24  ;;  %1347 = vrot.lane.b32.xlu1 %v1346_v41, %s1401_s27  ;;  %v762_v40 = vrot.slane %v757_v25, %v1482_v5 }
 0x355   : > { %969 = vrot.lane.b32.xlu1 %v832_v45, %s1401_s27  ;;  %1352 = vrot.lane.b32.xlu0 %v1351_v46, %s1403_s10 }
 0x359   : > { %943 = vrot.lane.b32.xlu1 %v790_v47, %s1403_s10 }
 0x3ab   : > { %v1009_v48 = vpop.permute.xlu0 %1008 }
 0x3af   : > { %v983_v50 = vpop.permute.xlu0 %982  ;;  %v1039_v52 = vpop.permute.xlu1 %1038 }
 0x3b3   : > { %v957_v53 = vpop.permute.xlu0 %956  ;;  %v1022_v54 = vpop.permute.xlu1 %1021 }
 0x3b7   : > { %v1318_v51 = vpop.permute.xlu0 %1317  ;;  %v996_v55 = vpop.permute.xlu1 %995 }
 0x3b8   : > { %v1320_v56 = vunpack.i.h.bf16 %v1318_v51  ;;  %v1319_v57 = vunpack.i.l.bf16 %v1318_v51 }
 0x3ba   : > { %v1041_v58 = vsel %vm631_vm12, %v1320_v56, %v1039_v52  ;;  %v1040_v59 = vsel %vm631_vm12, %v1319_v57, %v1320_v56 }
 0x3bb   : > { %v1323_v60 = vpop.permute.xlu0 %1322  ;;  %v1328_v62 = vpop.permute.xlu1 %1327  ;;  %v1053_v63 = vpack.c.bf16 %v1041_v58, %v1041_v58  ;;  %v1052_v0 = vpack.c.bf16 %v1040_v59, %v1040_v59 }
 0x3bc   : > { %v1325_v1 = vunpack.i.h.bf16 %v1323_v60  ;;  %v1324_v2 = vunpack.i.l.bf16 %v1323_v60  ;;  %v1330_v3 = vunpack.i.h.bf16 %v1328_v62  ;;  %v1329_v4 = vunpack.i.l.bf16 %v1328_v62 }
 0x3bd   : > { %1229 = vmatprep.subr.msk.bf16.mxu1 %vm651_vm13, %v1053_v63  ;;  %v1059_v7 = vsel %vm651_vm13, %v1052_v0, 0 }
 0x3be   : > { %1071 = vmatpush1.bf16.msra.mxu1 %v1059_v7  ;;  %v1015_v8 = vsel %vm603_vm14, %v1324_v2, %v1325_v1  ;;  %v1028_v10 = vsel %vm1807_vm0, %v1329_v4, %v1330_v3  ;;  %v1014_v44 = vsel %vm603_vm14, %v1009_v48, %v1324_v2  ;;  %v1027_v12 = vsel %vm1808_vm4, %v1022_v54, %v1329_v4 }
 0x3bf   : > { %v1333_v13 = vpop.permute.xlu0 %1332  ;;  %v1338_v14 = vpop.permute.xlu1 %1337  ;;  %v1051_v15 = vpack.c.bf16 %v1028_v10, %v1015_v8  ;;  %v1050_v16 = vpack.c.bf16 %v1027_v12, %v1014_v44  ;;  %v769_v48 = vmul.f32 %v762_v40, %v1713_v49 }
 0x3c0   : > { %v1335_v17 = vunpack.i.h.bf16 %v1333_v13  ;;  %v1334_v18 = vunpack.i.l.bf16 %v1333_v13  ;;  %v1340_v19 = vunpack.i.h.bf16 %v1338_v14  ;;  %v1339_v20 = vunpack.i.l.bf16 %v1338_v14 }
 0x3c1   : > { %1072 = vmatprep.subr.bf16.mxu1 %v1051_v15 }
 0x3c2   : > { %1073 = vmatpush1.bf16.msra.mxu1 %v1050_v16  ;;  %v989_v21 = vsel %vm575_vm2, %v1334_v18, %v1335_v17  ;;  %v1002_v22 = vsel %vm1809_vm5, %v1339_v20, %v1340_v19  ;;  %v988_v23 = vsel %vm575_vm2, %v983_v50, %v1334_v18  ;;  %v1001_v24 = vsel %vm1810_vm6, %v996_v55, %v1339_v20 }
 0x3c3   : > { %v1343_v26 = vpop.permute.xlu0 %1342  ;;  %v1348_v27 = vpop.permute.xlu1 %1347  ;;  %v1049_v28 = vpack.c.bf16 %v1002_v22, %v989_v21  ;;  %v1048_v29 = vpack.c.bf16 %v1001_v24, %v988_v23 }
 0x3c4   : > { %v1345_v30 = vunpack.i.h.bf16 %v1343_v26  ;;  %v1344_v31 = vunpack.i.l.bf16 %v1343_v26  ;;  %v1350_v32 = vunpack.i.h.bf16 %v1348_v27  ;;  %v1349_v33 = vunpack.i.l.bf16 %v1348_v27 }
 0x3c5   : > { %1074 = vmatprep.subr.bf16.mxu1 %v1049_v28 }
 0x3c6   : > { %1075 = vmatpush1.bf16.msra.mxu1 %v1048_v29  ;;  %v963_v35 = vsel %vm547_vm15, %v1344_v31, %v1345_v30  ;;  %v976_v36 = vsel %vm1811_vm7, %v1349_v33, %v1350_v32  ;;  %v962_v43 = vsel %vm547_vm15, %v957_v53, %v1344_v31  ;;  %v1054_v53 = vld [vmem:[%s1797_s3] sm:$0xf] }
 0x3c7   : > { %v1353_v37 = vpop.permute.xlu0 %1352  ;;  %v970_v38 = vpop.permute.xlu1 %969  ;;  %v1047_v39 = vpack.c.bf16 %v976_v36, %v963_v35 }
 0x3c8   : > { %v1355_v41 = vunpack.i.h.bf16 %v1353_v37  ;;  %v1354_v42 = vunpack.i.l.bf16 %v1353_v37  ;;  %v975_v45 = vsel %vm1812_vm8, %v970_v38, %v1349_v33 }
 0x3c9   : > { %v1046_v46 = vpack.c.bf16 %v975_v45, %v962_v43  ;;  %1076 = vmatprep.subr.bf16.mxu1 %v1047_v39 }
 0x3ca   : > { %v950_v47 = vsel %vm1813_vm9, %v1354_v42, %v1355_v41 }
 0x3cb   : > { %v944_v50 = vpop.permute.xlu1 %943  ;;  %1077 = vmatpush1.bf16.msra.mxu1 %v1046_v46  ;;  %v1045_v52 = vpack.c.bf16 %v950_v47, %v770_v6 }
 0x3cc   : > { %v949_v5 = vsel %vm1814_vm10, %v944_v50, %v1354_v42 }
 0x3cd   : > { %v1044_v54 = vpack.c.bf16 %v949_v5, %v769_v48  ;;  %1078 = vmatprep.subr.bf16.mxu1 %v1045_v52 }
 0x3cf   : > { %1079 = vmatpush1.bf16.msra.mxu1 %v1044_v54 }
 0x3d2   : > { %1230 = vmatmul.mubr.msk.bf16.vlgmr.msra.gmra.mxu1 %vm1815_vm11, %v1054_v53 }
 0x492   : > { %v1098_v51 = vpop.f32.mrf.mxu1 }
 0x493   : > { %v1106_v55 = vmul.f32 %v1105_v61, %v1098_v51 }
 0x494   : > { %v1100_v49 = vpop.f32.mrf.mxu1 }
 0x495   : > { %v1110_v56 = vadd.f32 %v1106_v55, %v1494_v9  ;;  %v1107_v57 = vmul.f32 %v1105_v61, %v1100_v49 }
 0x496   : > { %v1102_v58 = vpop.f32.mrf.mxu1 }
 0x497   : > { %1112 = vst [vmem:[%s282_s18] sm:$0xff] %v1110_v56  ;;  %v1111_v59 = vadd.f32 %v1107_v57, %v1496_v11 }
 0x498   : > { %v1103_v60 = vpop.f32.mrf.mxu1 }
 0x499   : > { %1113 = vst [vmem:[%s282_s18 + $0x8] sm:$0xff] %v1111_v59 }
 0x49a PF: > { %s17_s21 = sadd.s32 1, %s1383_s21  }
 0x49b   : > { %p14_p1 = scmp.ge.s32.totalorder %s17_s21, 4  }
 0x49d   :  { %16 = sbr.rel (!%p14_p1) target bundleno = 1 (0x1), region = 90 }
 0x4a2   :  { %1135 = vsyncpa [#allocation4], 1 }
 0x4a3   :  { %1137 = vsyncpa [#allocation4 + $0x1], 1 }

</bundles_post_ra>
